<compile_context>
chip_gen: v6e
topology: v6e:2x2x1
jax: 0.10.0
libtpu: 0.0.40
codegen_flags: <defaults>
</compile_context>

<pallas_src>
import jax
import jax.numpy as jnp
from jax.experimental import pallas as pl
from jax.experimental.pallas import tpu as pltpu

_HIGHEST = jax.lax.Precision.HIGHEST


# ---------------------------------------------------------------------------
# Sinusoidal position embedding (standard generate_position_embedding)
# ---------------------------------------------------------------------------
def generate_position_embedding(in_channels: int, max_len: int) -> jnp.ndarray:
    """Returns (max_len, in_channels) float32 sinusoidal embedding."""
    assert in_channels % 2 == 0, "in_channels must be even for sin/cos interleave"
    pos = jnp.arange(max_len, dtype=jnp.float32)[:, None]                      # (L, 1)
    div = jnp.exp(
        jnp.arange(0, in_channels, 2, dtype=jnp.float32)
        * (-jnp.log(10000.0) / in_channels)
    )                                                                          # (C/2,)
    pe = jnp.zeros((max_len, in_channels), dtype=jnp.float32)
    pe = pe.at[:, 0::2].set(jnp.sin(pos * div))
    pe = pe.at[:, 1::2].set(jnp.cos(pos * div))
    return pe


# ---------------------------------------------------------------------------
# Pallas kernel: lane-dense broadcast-add of the scaled position encoding.
# One grid step processes RT rows; each row is one (batch, channel) pair with
# its H*W spatial elements flattened onto the lane axis.
# ---------------------------------------------------------------------------
def adaptive_pe_add_kernel(x_ref, pe_rows_ref, e_ref, o_ref):
    # x_ref/o_ref:  (RT, H*W)   lane-dense input/output rows (x dtype)
    # pe_rows_ref:  (RT, H+W)   [h_scale*h_pe | w_scale*w_pe] per row, f32
    # e_ref:        (H+W, H*W)  stacked 0/1 expansion matrix (grid-invariant):
    #                           e[h,     s] = 1 iff s // W == h
    #                           e[H + w, s] = 1 iff s %  W == w
    #
    # pe[r, s] = pe_rows[r, s//W] + pe_rows[r, H + s%W], rebuilt with a single
    # MXU matmul (exact: E is 0/1, precision=HIGHEST).  The MXU is otherwise
    # idle in this HBM-bound kernel, so the matmul is free filler.
    pe = jnp.dot(pe_rows_ref[...], e_ref[...],
                 preferred_element_type=jnp.float32, precision=_HIGHEST)
    o_ref[...] = (x_ref[...].astype(jnp.float32) + pe).astype(o_ref.dtype)


def _pick_row_tile(total_rows: int, hw: int, itemsize: int) -> int:
    """Row tile for the (B*C, H*W) layout.

    - Tiny totals: one block (grid=(1,)) -- per-step pipeline overhead would
      dominate the work otherwise.
    - Large totals: ~2 MiB x-blocks (85%+ HBM-roofline band on v5e/v6e/v7x),
      keeping x(2 bufs)+out(2 bufs) ~8 MiB -- safely under the 16 MiB v5e
      scoped-VMEM default and the ~24-28 MiB safe budget on v7x -- and >=2 grid
      steps so the 'parallel' axis can shard across v7x's two TensorCores.
    """
    sublane = max(8, 32 // itemsize)      # (8,128) f32 tiling, (16,128) bf16
    row_bytes = hw * itemsize
    total_bytes = total_rows * row_bytes
    if (total_bytes <= (2 << 20)
            or total_rows % sublane != 0
            or total_rows < 2 * sublane):
        return total_rows                 # single full block -- always legal
    target_rt = max(sublane, ((2 << 20) // row_bytes) // sublane * sublane)
    half_rt = max(sublane, (total_rows // 2) // sublane * sublane)
    rt = min(target_rt, half_rt, total_rows)
    while total_rows % rt != 0:
        rt -= sublane
    return rt


# ---------------------------------------------------------------------------
# Wrapper: NCHW in / NCHW out.  Pool + scale-MLPs hoisted to JAX (microscopic),
# the heavy broadcast-add runs in the Pallas kernel with lane-dense blocks.
# ---------------------------------------------------------------------------
def _forward(x_nchw, params, h_pe_full, w_pe_full):
    B, C, H, W = x_nchw.shape
    HW = H * W
    dtype = x_nchw.dtype

    # Contiguous dim-merge (no transpose): (B, C, H, W) -> (B*C, H*W).
    x2d = x_nchw.reshape(B * C, HW)

    # ---- hoisted: global max-pool + fused 1x1-conv scale MLPs (all tiny) ----
    pooled = jnp.max(x2d, axis=1).astype(jnp.float32).reshape(B, C)      # (B, C)

    def w2d(w):                                     # (Co, Ci, 1, 1) -> (Ci, Co)
        return jnp.transpose(w[:, :, 0, 0]).astype(jnp.float32)

    mm = lambda a, b: jnp.dot(a, b, precision=_HIGHEST)
    # Fuse the first conv of both branches into one (C, 2C) matmul.
    w1 = jnp.concatenate([w2d(params["h_w1"]), w2d(params["w_w1"])], axis=1)   # (C, 2C)
    b1 = jnp.concatenate([params["h_b1"], params["w_b1"]]).astype(jnp.float32) # (2C,)
    hidden = jnp.maximum(mm(pooled, w1) + b1, 0.0)                             # (B, 2C)
    h_scale = jax.nn.sigmoid(mm(hidden[:, :C], w2d(params["h_w2"]))
                             + params["h_b2"].astype(jnp.float32))             # (B, C)
    w_scale = jax.nn.sigmoid(mm(hidden[:, C:], w2d(params["w_w2"]))
                             + params["w_b2"].astype(jnp.float32))             # (B, C)

    # ---- per-(batch, channel) scaled PE rows, fused: (B*C, H+W), f32 ----
    hpe_t = jnp.transpose(h_pe_full[:H].astype(jnp.float32))            # (C, H)
    wpe_t = jnp.transpose(w_pe_full[:W].astype(jnp.float32))            # (C, W)
    hpe_rows = (h_scale[:, :, None] * hpe_t[None]).reshape(B * C, H)
    wpe_rows = (w_scale[:, :, None] * wpe_t[None]).reshape(B * C, W)
    pe_rows = jnp.concatenate([hpe_rows, wpe_rows], axis=1)             # (B*C, H+W)

    # ---- stacked 0/1 lane-expansion matrix (grid-invariant, tiny) ----
    s = jnp.arange(HW, dtype=jnp.int32)
    eh = s[None, :] // W == jnp.arange(H, dtype=jnp.int32)[:, None]     # (H, HW)
    ew = s[None, :] % W == jnp.arange(W, dtype=jnp.int32)[:, None]      # (W, HW)
    e_mat = jnp.concatenate([eh, ew], axis=0).astype(jnp.float32)       # (H+W, HW)

    rt = _pick_row_tile(B * C, HW, dtype.itemsize)
    grid = ((B * C) // rt,)

    # Grid-invariant operand: drop the useless second pipeline buffer once the
    # slab is large enough to matter (negligible at the tiny test shape, where
    # we keep the default to stay on the previously validated path).
    e_spec_kwargs = {}
    if (H + W) * HW * 4 >= (256 << 10):
        e_spec_kwargs["pipeline_mode"] = pl.Buffered(1)

    # NOTE: output last dim == HW.  If HW % 128 != 0 the full-dim block is still
    # legal but stores fall back to masked vst.msk; pad H*W to a multiple of 128
    # upstream if that ever shows up in a profile (true for the test shape: 128).
    out2d = pl.pallas_call(
        adaptive_pe_add_kernel,
        out_shape=jax.ShapeDtypeStruct((B * C, HW), dtype),
        grid_spec=pltpu.PrefetchScalarGridSpec(
            num_scalar_prefetch=0,
            grid=grid,
            in_specs=[
                pl.BlockSpec((rt, HW), lambda i: (i, 0)),      # x rows (lane-dense)
                pl.BlockSpec((rt, H + W), lambda i: (i, 0)),   # fused scaled PE rows
                pl.BlockSpec((H + W, HW), lambda i: (0, 0),    # stacked expansion mat
                             **e_spec_kwargs),
            ],
            out_specs=pl.BlockSpec((rt, HW), lambda i: (i, 0)),
        ),
        compiler_params=pltpu.CompilerParams(
            dimension_semantics=("parallel",)),
        input_output_aliases={0: 0},          # out reuses x2d's HBM buffer
    )(x2d, pe_rows, e_mat)

    return out2d.reshape(B, C, H, W)


adaptive_2d_position_encoder = jax.jit(_forward, donate_argnums=(0,))


# ---------------------------------------------------------------------------
# Pure-JAX reference (mirrors the PyTorch forward in NCHW).
# ---------------------------------------------------------------------------
def reference(x_nchw, params, h_pe_full, w_pe_full):
    B, C, H, W = x_nchw.shape
    x = x_nchw.astype(jnp.float32)
    pooled = jnp.max(x, axis=(2, 3))                                     # (B, C)

    def branch(p, w1, b1, w2, b2):
        h = jnp.maximum(jnp.dot(p, w1[:, :, 0, 0].T, precision=_HIGHEST) + b1, 0.0)
        return jax.nn.sigmoid(jnp.dot(h, w2[:, :, 0, 0].T, precision=_HIGHEST) + b2)

    h_scale = branch(pooled, params["h_w1"], params["h_b1"],
                     params["h_w2"], params["h_b2"])
    w_scale = branch(pooled, params["w_w1"], params["w_b1"],
                     params["w_w2"], params["w_b2"])

    h_pe = h_pe_full[:H].T[None, :, :, None]                             # (1, C, H, 1)
    w_pe = w_pe_full[:W].T[None, :, None, :]                             # (1, C, 1, W)
    return (x
            + h_scale[:, :, None, None] * h_pe
            + w_scale[:, :, None, None] * w_pe)


if __name__ == "__main__":
    B, C, H, W = 2, 32, 8, 16
    MAX_H, MAX_W = 200, 200

    key = jax.random.PRNGKey(0)
    k_x, k1, k2, k3, k4, k5, k6, k7, k8 = jax.random.split(key, 9)

    x = jax.random.normal(k_x, (B, C, H, W), dtype=jnp.float32)

    std = 0.1
    params = {
        "h_w1": std * jax.random.normal(k1, (C, C, 1, 1), dtype=jnp.float32),
        "h_b1": std * jax.random.normal(k2, (C,), dtype=jnp.float32),
        "h_w2": std * jax.random.normal(k3, (C, C, 1, 1), dtype=jnp.float32),
        "h_b2": std * jax.random.normal(k4, (C,), dtype=jnp.float32),
        "w_w1": std * jax.random.normal(k5, (C, C, 1, 1), dtype=jnp.float32),
        "w_b1": std * jax.random.normal(k6, (C,), dtype=jnp.float32),
        "w_w2": std * jax.random.normal(k7, (C, C, 1, 1), dtype=jnp.float32),
        "w_b2": std * jax.random.normal(k8, (C,), dtype=jnp.float32),
    }

    h_pe_full = generate_position_embedding(C, MAX_H)                   # (max_h, C)
    w_pe_full = generate_position_embedding(C, MAX_W)                   # (max_w, C)

    # Compute the reference BEFORE the kernel call: x is donated to the Pallas
    # path (its HBM buffer is reused for the output via input_output_aliases).
    ref = jax.block_until_ready(reference(x, params, h_pe_full, w_pe_full))

    out = adaptive_2d_position_encoder(x, params, h_pe_full, w_pe_full)
    out = jax.block_until_ready(out)

    assert out.shape == (B, C, H, W)
    assert bool(jnp.allclose(out, ref, atol=1e-4, rtol=1e-4)), "mismatch vs reference"

    print("KERNEL_OK")
</pallas_src>

<mosaic_0001>
module attributes {stable_mosaic.version = 11 : i64} {
  func.func @adaptive_pe_add_kernel(%arg0: i32, %arg1: memref<64x128xf32, #tpu.memory_space<vmem>>, %arg2: memref<64x24xf32, #tpu.memory_space<vmem>>, %arg3: memref<24x128xf32, #tpu.memory_space<vmem>>, %arg4: memref<64x128xf32, #tpu.memory_space<vmem>>) attributes {dimension_semantics = [#tpu.dimension_semantics<parallel>], iteration_bounds = array<i64: 1>, scalar_prefetch = 0 : i64, scratch_operands = 0 : i64, tpu.core_type = #tpu.core_type<tc>, window_params = [{transform_indices = @transform_0, window_bounds = array<i64: 64, 128>}, {transform_indices = @transform_1, window_bounds = array<i64: 64, 24>}, {pipeline_mode = #tpu.pipeline_mode<synchronous>, transform_indices = @transform_2, window_bounds = array<i64: 24, 128>}, {transform_indices = @transform_3, window_bounds = array<i64: 64, 128>}]} {
    %c0 = arith.constant 0 : index
    %c0_0 = arith.constant 0 : index
    %0 = vector.load %arg2[%c0, %c0_0] : memref<64x24xf32, #tpu.memory_space<vmem>>, vector<64x24xf32>
    %c0_1 = arith.constant 0 : index
    %c0_2 = arith.constant 0 : index
    %1 = vector.load %arg3[%c0_1, %c0_2] : memref<24x128xf32, #tpu.memory_space<vmem>>, vector<24x128xf32>
    %cst = arith.constant dense<0.000000e+00> : vector<64x128xf32>
    %2 = tpu.matmul %0, %1, %cst {dimension_numbers = #tpu.dot_dimension_numbers<[1], [0], [0], [1], [0, 0, 1, 1], [], []>, precision = #tpu.contract_precision<fp32>} : vector<64x24xf32>, vector<24x128xf32>, vector<64x128xf32> -> vector<64x128xf32>
    %c0_3 = arith.constant 0 : index
    %c0_4 = arith.constant 0 : index
    %3 = vector.load %arg1[%c0_3, %c0_4] : memref<64x128xf32, #tpu.memory_space<vmem>>, vector<64x128xf32>
    %4 = arith.addf %3, %2 : vector<64x128xf32>
    %c0_5 = arith.constant 0 : index
    %c0_6 = arith.constant 0 : index
    %5 = vector.load %arg4[%c0_5, %c0_6] : memref<64x128xf32, #tpu.memory_space<vmem>>, vector<64x128xf32>
    tpu.vector_store %arg4[%c0_5, %c0_6], %4 {strides = array<i32>} : memref<64x128xf32, #tpu.memory_space<vmem>>, vector<64x128xf32>,
    return
  }
  func.func @transform_0(%arg0: i32) -> (i32, i32) {
    %c0_i32 = arith.constant 0 : i32
    %c0_i32_0 = arith.constant 0 : i32
    return %arg0, %c0_i32 : i32, i32
  }
  func.func @transform_1(%arg0: i32) -> (i32, i32) {
    %c0_i32 = arith.constant 0 : i32
    %c0_i32_0 = arith.constant 0 : i32
    return %arg0, %c0_i32 : i32, i32
  }
  func.func @transform_2(%arg0: i32) -> (i32, i32) {
    %c0_i32 = arith.constant 0 : i32
    %c0_i32_0 = arith.constant 0 : i32
    %c0_i32_1 = arith.constant 0 : i32
    return %c0_i32, %c0_i32_0 : i32, i32
  }
  func.func @transform_3(%arg0: i32) -> (i32, i32) {
    %c0_i32 = arith.constant 0 : i32
    %c0_i32_0 = arith.constant 0 : i32
    return %arg0, %c0_i32 : i32, i32
  }
}

</mosaic_0001>

<bundles_post_ra>
// kernel: _forward.1
= control target key start
LH: loop header
LB: loop body
LE: loop exit
PB: predicated region body
PF: predicated region fallthrough
CT: control target
= control target key end

     0   :  { %vm25_vm0 = vcmask 195584   ;;  %s1292_s2 = inlined_call_operand.vmem [shape: f32[24,128], index: 2, kind: input, shape index: {}]   ;;  %s1293_s1 = inlined_call_operand.vmem [shape: f32[64,24], index: 1, kind: input, shape index: {}]   ;;  %s1294_s0 = inlined_call_operand.vmem [shape: f32[64,128], index: 0, kind: input, shape index: {}, may-alias: {0,3}]   ;;  %s1295_s3 = inlined_call_operand.vmem [shape: f32[64,128], index: 3, kind: output, shape index: {}, may-alias: {0,3}]  }
   0x1   :  { %v24_v0 = vld [vmem:[%s1292_s2 + $0x10] sm:$0xff]  ;;  %v23_v1 = vld [vmem:[%s1292_s2 + $0x8] sm:$0xff]  ;;  %v22_v2 = vld [vmem:[%s1292_s2] sm:$0xff] }
   0x2   :  { %v1054_v3 = vand.u32 4294901760, %v24_v0  ;;  %v1056_v4 = vand.u32 4294901760, %v23_v1  ;;  %v1058_v5 = vand.u32 4294901760, %v22_v2  ;;  %v14_v6 = vld [vmem:[%s1293_s1] sm:$0xff]  ;;  %v15_v7 = vld [vmem:[%s1293_s1 + $0x8] sm:$0xff]  ;;  %v16_v8 = vld [vmem:[%s1293_s1 + $0x10] sm:$0xff] }
   0x3   :  { %v27_v9 = vsel %vm25_vm0, %v14_v6, 0  ;;  %v30_v10 = vsel %vm25_vm0, %v15_v7, 0  ;;  %v33_v11 = vsel %vm25_vm0, %v16_v8, 0  ;;  %v17_v12 = vld [vmem:[%s1293_s1 + $0x18] sm:$0xff]  ;;  %v18_v13 = vld [vmem:[%s1293_s1 + $0x20] sm:$0xff]  ;;  %v19_v38 = vld [vmem:[%s1293_s1 + $0x28] sm:$0xff] }
   0x4   :  { %917 = vmatprep.subr.mxu0 %v1054_v3  ;;  %v1080_v14 = vsub.f32 %v24_v0, %v1054_v3  ;;  %v1082_v15 = vand.u32 4294901760, %v27_v9  ;;  %v1084_v16 = vand.u32 4294901760, %v30_v10  ;;  %v1087_v17 = vsub.f32 %v23_v1, %v1056_v4  ;;  %v20_v39 = vld [vmem:[%s1293_s1 + $0x30] sm:$0xff]  ;;  %v21_v48 = vld [vmem:[%s1293_s1 + $0x38] sm:$0xff] }
   0x5   :  { %918 = vmatpush3.msra.mxu0 %v1054_v3  ;;  %v1091_v18 = vsub.f32 %v22_v2, %v1058_v5  ;;  %v1093_v19 = vand.u32 4294901760, %v33_v11  ;;  %v36_v20 = vsel %vm25_vm0, %v17_v12, 0  ;;  %v39_v21 = vsel %vm25_vm0, %v18_v13, 0 }
   0x6   :  { %919 = vmatprep.subr.mxu0 %v1056_v4  ;;  %v1099_v22 = vand.u32 4294901760, %v1080_v14  ;;  %v1102_v23 = vsub.f32 %v27_v9, %v1082_v15  ;;  %v1105_v24 = vsub.f32 %v30_v10, %v1084_v16  ;;  %v1108_v25 = vand.u32 4294901760, %v1087_v17  ;;  %941 = vmatprep.mubr.f32.mxu1 %v1082_v15 }
   0x7   :  { %920 = vmatpush3.msra.mxu0 %v1056_v4  ;;  %v1113_v26 = vand.u32 4294901760, %v1091_v18  ;;  %v1116_v27 = vsub.f32 %v33_v11, %v1093_v19  ;;  %v1118_v28 = vand.u32 4294901760, %v36_v20  ;;  %v1120_v29 = vand.u32 4294901760, %v39_v21 }
   0x8   :  { %921 = vmatprep.subr.mxu0 %v1058_v5  ;;  %v228_v30 = vsub.f32 %v1080_v14, %v1099_v22  ;;  %v120_v31 = vand.u32 4294901760, %v1102_v23  ;;  %v130_v32 = vand.u32 4294901760, %v1105_v24  ;;  %v235_v33 = vsub.f32 %v1087_v17, %v1108_v25 }
   0x9   :  { %922 = vmatpush3.msra.mxu0 %v1058_v5  ;;  %v242_v34 = vsub.f32 %v1091_v18, %v1113_v26  ;;  %v140_v35 = vand.u32 4294901760, %v1116_v27  ;;  %v1134_v36 = vsub.f32 %v36_v20, %v1118_v28  ;;  %v1137_v37 = vsub.f32 %v39_v21, %v1120_v29 }
   0xa   :  { %v229_v40 = vand.u32 4294901760, %v228_v30  ;;  %v121_v41 = vsub.f32 %v1102_v23, %v120_v31  ;;  %v131_v42 = vsub.f32 %v1105_v24, %v130_v32  ;;  %v236_v43 = vand.u32 4294901760, %v235_v33  ;;  %953 = vmatprep.subr.mxu0 %v1080_v14 }
   0xb   :  { %v243_v44 = vand.u32 4294901760, %v242_v34  ;;  %v141_v45 = vsub.f32 %v1116_v27, %v140_v35  ;;  %v150_v46 = vand.u32 4294901760, %v1134_v36  ;;  %v160_v47 = vand.u32 4294901760, %v1137_v37 }
   0xc   :  { %935 = vmatprep.subr.mxu1 %v229_v40  ;;  %v122_v49 = vand.u32 4294901760, %v121_v41  ;;  %v132_v50 = vand.u32 4294901760, %v131_v42  ;;  %v42_v51 = vsel %vm25_vm0, %v19_v38, 0  ;;  %v45_v52 = vsel %vm25_vm0, %v20_v39, 0 }
   0xd   :  { %936 = vmatpush3.msra.mxu1 %v229_v40  ;;  %v142_v53 = vand.u32 4294901760, %v141_v45  ;;  %v151_v54 = vsub.f32 %v1134_v36, %v150_v46  ;;  %v161_v55 = vsub.f32 %v1137_v37, %v160_v47  ;;  %v1168_v56 = vand.u32 4294901760, %v42_v51 }
   0xe   :  { %923 = vmatprep.mubr.f32.mxu0 %v122_v49  ;;  %937 = vmatprep.subr.mxu1 %v236_v43  ;;  %v1170_v57 = vand.u32 4294901760, %v45_v52  ;;  %v48_v58 = vsel %vm25_vm0, %v21_v48, 0 }
   0xf   :  { %924 = vmatmul.mubr.f32.vlgmr.msra.gmra.mxu0 %v132_v50  ;;  %938 = vmatpush3.msra.mxu1 %v236_v43  ;;  %v152_v59 = vand.u32 4294901760, %v151_v54  ;;  %v1174_v60 = vsub.f32 %v42_v51, %v1168_v56  ;;  %v1176_v61 = vand.u32 4294901760, %v48_v58  ;;  %v162_v62 = vand.u32 4294901760, %v161_v55 }
  0x10   :  { %939 = vmatprep.subr.mxu1 %v243_v44  ;;  %926 = vmatprep.mubr.f32.mxu0 %v142_v53  ;;  %v179_v63 = vsub.f32 %v45_v52, %v1170_v57 }
  0x11   :  { %940 = vmatpush3.msra.mxu1 %v243_v44  ;;  %954 = vmatpush3.msra.mxu0 %v1080_v14  ;;  %v170_v0 = vand.u32 4294901760, %v1174_v60  ;;  %v189_v1 = vsub.f32 %v48_v58, %v1176_v61 }
  0x12   :  { %942 = vmatmul.mubr.f32.vlgmr.msra.gmra.mxu1 %v1084_v16  ;;  %971 = vmatprep.subr.mxu1 %v1054_v3  ;;  %v180_v2 = vand.u32 4294901760, %v179_v63 }
  0x13   :  { %927 = vmatmul.mubr.f32.gmra.mxu0 %v152_v59  ;;  %972 = vmatpush3.msra.mxu1 %v1054_v3  ;;  %v171_v6 = vsub.f32 %v1174_v60, %v170_v0  ;;  %v190_v7 = vand.u32 4294901760, %v189_v1 }
  0x14   :  { %929 = vmatprep.mubr.f32.mxu0 %v162_v62  ;;  %944 = vmatprep.mubr.f32.mxu1 %v1093_v19  ;;  %v181_v8 = vsub.f32 %v179_v63, %v180_v2 }
  0x15   :  { %v172_v9 = vand.u32 4294901760, %v171_v6  ;;  %955 = vmatprep.subr.mxu0 %v1087_v17  ;;  %973 = vmatprep.subr.mxu1 %v1056_v4  ;;  %v191_v10 = vsub.f32 %v189_v1, %v190_v7 }
  0x16   :  { %945 = vmatmul.mubr.f32.gmra.mxu1 %v1118_v28  ;;  %956 = vmatpush3.msra.mxu0 %v1087_v17  ;;  %v182_v11 = vand.u32 4294901760, %v181_v8 }
  0x17   :  { %930 = vmatmul.mubr.f32.gmra.mxu0 %v172_v9  ;;  %947 = vmatprep.mubr.f32.mxu1 %v1120_v29  ;;  %v192_v12 = vand.u32 4294901760, %v191_v10 }
  0x18   :  { %932 = vmatprep.mubr.f32.mxu0 %v182_v11  ;;  %974 = vmatpush3.msra.mxu1 %v1056_v4 }
  0x19   :  { %957 = vmatprep.subr.mxu0 %v1091_v18  ;;  %975 = vmatprep.subr.mxu1 %v1058_v5 }
  0x1a   :  { %948 = vmatmul.mubr.f32.gmra.mxu1 %v1168_v56  ;;  %958 = vmatpush3.msra.mxu0 %v1091_v18 }
  0x1b   :  { %933 = vmatmul.mubr.f32.gmra.mxu0 %v192_v12  ;;  %950 = vmatprep.mubr.f32.mxu1 %v1170_v57 }
  0x1c   :  { %959 = vmatprep.mubr.f32.mxu0 %v1102_v23  ;;  %976 = vmatpush3.msra.mxu1 %v1058_v5 }
  0x1d   :  { %989 = vmatprep.subr.mxu0 %v1099_v22  ;;  %1007 = vmatprep.subr.mxu1 %v1054_v3 }
  0x1e   :  { %951 = vmatmul.mubr.f32.gmra.mxu1 %v1176_v61 }
  0x1f   :  { %960 = vmatmul.mubr.f32.vlgmr.msra.gmra.mxu0 %v1105_v24  ;;  %977 = vmatprep.mubr.f32.mxu1 %v120_v31 }
  0x20   :  { %962 = vmatprep.mubr.f32.mxu0 %v1116_v27  ;;  %990 = vmatpush3.msra.mxu0 %v1099_v22 }
  0x21   :  { %991 = vmatprep.subr.mxu0 %v1108_v25 }
  0x22   :  { %978 = vmatmul.mubr.f32.vlgmr.msra.gmra.mxu1 %v130_v32  ;;  %992 = vmatpush3.msra.mxu0 %v1108_v25 }
  0x23   :  { %963 = vmatmul.mubr.f32.gmra.mxu0 %v1134_v36  ;;  %1008 = vmatpush3.msra.mxu1 %v1054_v3 }
  0x24   :  { %965 = vmatprep.mubr.f32.mxu0 %v1137_v37  ;;  %980 = vmatprep.mubr.f32.mxu1 %v140_v35 }
  0x25   :  { %1009 = vmatprep.subr.mxu1 %v1056_v4  ;;  %993 = vmatprep.subr.mxu0 %v1113_v26 }
  0x26   :  { %981 = vmatmul.mubr.f32.gmra.mxu1 %v150_v46  ;;  %994 = vmatpush3.msra.mxu0 %v1113_v26 }
  0x27   :  { %966 = vmatmul.mubr.f32.gmra.mxu0 %v1174_v60  ;;  %983 = vmatprep.mubr.f32.mxu1 %v160_v47 }
  0x28   :  { %968 = vmatprep.mubr.f32.mxu0 %v179_v63  ;;  %1010 = vmatpush3.msra.mxu1 %v1056_v4 }
  0x29   :  { %1011 = vmatprep.subr.mxu1 %v1058_v5 }
  0x2a   :  { %984 = vmatmul.mubr.f32.gmra.mxu1 %v170_v0 }
  0x2b   :  { %969 = vmatmul.mubr.f32.gmra.mxu0 %v189_v1  ;;  %986 = vmatprep.mubr.f32.mxu1 %v180_v2  ;;  %v823_v1 = vld [vmem:[%s1294_s0] sm:$0xff] }
  0x2c   :  { %995 = vmatprep.mubr.f32.mxu0 %v1082_v15  ;;  %1012 = vmatpush3.msra.mxu1 %v1058_v5 }
  0x2e   :  { %987 = vmatmul.mubr.f32.gmra.mxu1 %v190_v7 }
  0x2f   :  { %996 = vmatmul.mubr.f32.vlgmr.msra.gmra.mxu0 %v1084_v16  ;;  %1013 = vmatprep.mubr.f32.mxu1 %v1082_v15 }
  0x30   :  { %998 = vmatprep.mubr.f32.mxu0 %v1093_v19 }
  0x32   :  { %1014 = vmatmul.mubr.f32.vlgmr.msra.gmra.mxu1 %v1084_v16 }
  0x33   :  { %999 = vmatmul.mubr.f32.gmra.mxu0 %v1118_v28  ;;  %1016 = vmatprep.mubr.f32.mxu1 %v1093_v19 }
  0x34   :  { %1001 = vmatprep.mubr.f32.mxu0 %v1120_v29 }
  0x36   :  { %1017 = vmatmul.mubr.f32.gmra.mxu1 %v1118_v28 }
  0x37   :  { %1002 = vmatmul.mubr.f32.gmra.mxu0 %v1168_v56  ;;  %1019 = vmatprep.mubr.f32.mxu1 %v1120_v29 }
  0x38   :  { %1004 = vmatprep.mubr.f32.mxu0 %v1170_v57 }
  0x3a   :  { %1020 = vmatmul.mubr.f32.gmra.mxu1 %v1168_v56  ;;  %v824_v56 = vld [vmem:[%s1294_s0 + $0x8] sm:$0xff] }
  0x3b   :  { %1005 = vmatmul.mubr.f32.gmra.mxu0 %v1176_v61  ;;  %1022 = vmatprep.mubr.f32.mxu1 %v1170_v57 }
  0x3e   :  { %1023 = vmatmul.mubr.f32.gmra.mxu1 %v1176_v61 }
  0xcf   :  { %v925_v3 = vpop.f32.mrf.mxu0 }
  0xd1   :  { %v124_v4 = vpop.f32.mrf.mxu0 }
  0xd2   :  { %v943_v5 = vpop.f32.mrf.mxu1 }
  0xd3   :  { %v928_v13 = vpop.f32.mrf.mxu0  ;;  %v287_v37 = vadd.f32 %v943_v5, %v925_v3  ;;  %v826_v3 = vld [vmem:[%s1294_s0 + $0x18] sm:$0xff] }
  0xd4   :  { %v280_v14 = vpop.f32.mrf.mxu1 }
  0xd5   :  { %v144_v15 = vpop.f32.mrf.mxu0  ;;  %v281_v40 = vadd.f32 %v280_v14, %v124_v4 }
  0xd6   :  { %v946_v16 = vpop.f32.mrf.mxu1 }
  0xd7   :  { %v931_v17 = vpop.f32.mrf.mxu0  ;;  %v299_v44 = vadd.f32 %v946_v16, %v928_v13 }
  0xd8   :  { %v292_v18 = vpop.f32.mrf.mxu1 }
  0xd9   :  { %v164_v19 = vpop.f32.mrf.mxu0  ;;  %v293_v49 = vadd.f32 %v292_v18, %v144_v15 }
  0xda   :  { %v949_v20 = vpop.f32.mrf.mxu1 }
  0xdb   :  { %v934_v21 = vpop.f32.mrf.mxu0  ;;  %v311_v54 = vadd.f32 %v949_v20, %v931_v17 }
  0xdc   :  { %v304_v22 = vpop.f32.mrf.mxu1 }
  0xdd   :  { %v184_v23 = vpop.f32.mrf.mxu0  ;;  %v305_v62 = vadd.f32 %v304_v22, %v164_v19 }
  0xde   :  { %v952_v24 = vpop.f32.mrf.mxu1 }
  0xdf   :  { %v961_v25 = vpop.f32.mrf.mxu0  ;;  %v323_v10 = vadd.f32 %v952_v24, %v934_v21 }
  0xe0   :  { %v316_v26 = vpop.f32.mrf.mxu1  ;;  %v408_v41 = vadd.f32 %v961_v25, %v287_v37 }
  0xe1   :  { %v400_v27 = vpop.f32.mrf.mxu0  ;;  %v317_v16 = vadd.f32 %v316_v26, %v184_v23 }
  0xe2   :  { %v979_v28 = vpop.f32.mrf.mxu1  ;;  %v401_v45 = vadd.f32 %v400_v27, %v281_v40 }
  0xe3   :  { %v964_v29 = vpop.f32.mrf.mxu0  ;;  %v534_v46 = vadd.f32 %v979_v28, %v408_v41 }
  0xe4   :  { %v525_v30 = vpop.f32.mrf.mxu1  ;;  %v422_v50 = vadd.f32 %v964_v29, %v299_v44 }
  0xe5   :  { %v414_v31 = vpop.f32.mrf.mxu0  ;;  %v526_v51 = vadd.f32 %v525_v30, %v401_v45 }
  0xe6   :  { %v982_v32 = vpop.f32.mrf.mxu1  ;;  %v415_v57 = vadd.f32 %v414_v31, %v293_v49 }
  0xe7   :  { %v967_v33 = vpop.f32.mrf.mxu0  ;;  %v550_v58 = vadd.f32 %v982_v32, %v422_v50 }
  0xe8   :  { %v541_v34 = vpop.f32.mrf.mxu1  ;;  %v436_v63 = vadd.f32 %v967_v33, %v311_v54 }
  0xe9   :  { %v428_v35 = vpop.f32.mrf.mxu0  ;;  %v542_v2 = vadd.f32 %v541_v34, %v415_v57 }
  0xea   :  { %v985_v36 = vpop.f32.mrf.mxu1  ;;  %v429_v11 = vadd.f32 %v428_v35, %v305_v62 }
  0xeb   :  { %v970_v38 = vpop.f32.mrf.mxu0  ;;  %v566_v4 = vadd.f32 %v985_v36, %v436_v63 }
  0xec   :  { %v557_v39 = vpop.f32.mrf.mxu1  ;;  %v450_v17 = vadd.f32 %v970_v38, %v323_v10 }
  0xed   :  { %v442_v42 = vpop.f32.mrf.mxu0  ;;  %v558_v20 = vadd.f32 %v557_v39, %v429_v11 }
  0xee   :  { %v988_v43 = vpop.f32.mrf.mxu1  ;;  %v443_v27 = vadd.f32 %v442_v42, %v317_v16 }
  0xef   :  { %v997_v47 = vpop.f32.mrf.mxu0  ;;  %v582_v26 = vadd.f32 %v988_v43, %v450_v17 }
  0xf0   :  { %v573_v48 = vpop.f32.mrf.mxu1  ;;  %v668_v52 = vadd.f32 %v997_v47, %v534_v46 }
  0xf1   :  { %v661_v53 = vpop.f32.mrf.mxu0  ;;  %v574_v35 = vadd.f32 %v573_v48, %v443_v27 }
  0xf2   :  { %v1015_v55 = vpop.f32.mrf.mxu1  ;;  %v662_v59 = vadd.f32 %v661_v53, %v526_v51 }
  0xf3   :  { %v1000_v60 = vpop.f32.mrf.mxu0  ;;  %v784_v61 = vadd.f32 %v1015_v55, %v668_v52 }
  0xf4   :  { %v777_v0 = vpop.f32.mrf.mxu1  ;;  %v680_v6 = vadd.f32 %v1000_v60, %v550_v58 }
  0xf5   :  { %v832_v7 = vadd.f32 %v824_v56, %v784_v61  ;;  %v673_v8 = vpop.f32.mrf.mxu0  ;;  %v778_v9 = vadd.f32 %v777_v0, %v662_v59 }
  0xf6   :  { %v1018_v12 = vpop.f32.mrf.mxu1  ;;  %v674_v5 = vadd.f32 %v673_v8, %v542_v2 }
  0xf7   :  { %840 = vst [vmem:[%s1295_s3 + $0x8] sm:$0xff] %v832_v7  ;;  %v831_v13 = vadd.f32 %v823_v1, %v778_v9  ;;  %v1003_v14 = vpop.f32.mrf.mxu0  ;;  %v796_v15 = vadd.f32 %v1018_v12, %v680_v6 }
  0xf8   :  { %v789_v18 = vpop.f32.mrf.mxu1  ;;  %v692_v21 = vadd.f32 %v1003_v14, %v566_v4 }
  0xf9   :  { %v834_v22 = vadd.f32 %v826_v3, %v796_v15  ;;  %v685_v24 = vpop.f32.mrf.mxu0  ;;  %v790_v25 = vadd.f32 %v789_v18, %v674_v5 }
  0xfa   :  { %v1021_v28 = vpop.f32.mrf.mxu1  ;;  %v686_v29 = vadd.f32 %v685_v24, %v558_v20 }
  0xfb   :  { %v1006_v31 = vpop.f32.mrf.mxu0  ;;  %v808_v32 = vadd.f32 %v1021_v28, %v692_v21 }
  0xfc   :  { %v801_v33 = vpop.f32.mrf.mxu1  ;;  %v704_v36 = vadd.f32 %v1006_v31, %v582_v26 }
  0xfd   :  { %v697_v38 = vpop.f32.mrf.mxu0  ;;  %v802_v39 = vadd.f32 %v801_v33, %v686_v29 }
  0xfe   :  { %v825_v19 = vld [vmem:[%s1294_s0 + $0x10] sm:$0xff]  ;;  %v1024_v40 = vpop.f32.mrf.mxu1  ;;  %v698_v42 = vadd.f32 %v697_v38, %v574_v35 }
  0xff   :  { %839 = vst [vmem:[%s1295_s3] sm:$0xff] %v831_v13  ;;  %v833_v30 = vadd.f32 %v825_v19, %v790_v25  ;;  %v820_v44 = vadd.f32 %v1024_v40, %v704_v36 }
 0x100   :  { %v813_v45 = vpop.f32.mrf.mxu1 }
 0x101   :  { %v814_v48 = vadd.f32 %v813_v45, %v698_v42 }
 0x106   :  { %v828_v23 = vld [vmem:[%s1294_s0 + $0x28] sm:$0xff] }
 0x107   :  { %842 = vst [vmem:[%s1295_s3 + $0x18] sm:$0xff] %v834_v22  ;;  %v836_v37 = vadd.f32 %v828_v23, %v808_v32 }
 0x10e   :  { %v827_v34 = vld [vmem:[%s1294_s0 + $0x20] sm:$0xff] }
 0x10f   :  { %841 = vst [vmem:[%s1295_s3 + $0x10] sm:$0xff] %v833_v30  ;;  %v835_v43 = vadd.f32 %v827_v34, %v802_v39 }
 0x116   :  { %v830_v41 = vld [vmem:[%s1294_s0 + $0x38] sm:$0xff] }
 0x117   :  { %844 = vst [vmem:[%s1295_s3 + $0x28] sm:$0xff] %v836_v37  ;;  %v838_v47 = vadd.f32 %v830_v41, %v820_v44 }
 0x11e   :  { %v829_v46 = vld [vmem:[%s1294_s0 + $0x30] sm:$0xff] }
 0x11f   :  { %843 = vst [vmem:[%s1295_s3 + $0x20] sm:$0xff] %v835_v43  ;;  %846 = vst [vmem:[%s1295_s3 + $0x38] sm:$0xff] %v838_v47  ;;  %v837_v49 = vadd.f32 %v829_v46, %v814_v48 }
 0x121   :  { %845 = vst [vmem:[%s1295_s3 + $0x30] sm:$0xff] %v837_v49 }

</bundles_post_ra>
